<compile_context>
chip_gen: v7x
topology: tpu7x:2x2x1
jax: 0.10.0
libtpu: 0.0.40
codegen_flags: <defaults>
</compile_context>

<pallas_src>
import jax
import jax.numpy as jnp
from jax import lax
from jax.experimental import pallas as pl
from jax.experimental.pallas import tpu as pltpu


def _round_up(x: int, m: int) -> int:
    return ((x + m - 1) // m) * m


def _pick_tile(dim: int, unit: int, max_tile: int, min_tile: int):
    """Pick a tile (multiple of `unit`) that divides round_up(dim, unit) when possible.

    Returns (tile, padded_dim)."""
    padded = _round_up(dim, unit)
    if padded <= max_tile:
        return padded, padded
    t = (max_tile // unit) * unit
    while t >= min_tile:
        if padded % t == 0:
            return t, padded
        t -= unit
    # No reasonable divisor: fall back to a full-size tile + end padding.
    t = (max_tile // unit) * unit
    return t, _round_up(dim, t)


def _linear_full_k_kernel(x_ref, w_ref, b_ref, o_ref):
    # x_ref: (tm, K), w_ref: (tn, K) [torch (Out, In) layout], b_ref: (1, tn).
    acc = lax.dot_general(
        x_ref[...], w_ref[...],
        dimension_numbers=(((1,), (1,)), ((), ())),   # 'mk,nk->mn'
        preferred_element_type=jnp.float32,
    )
    o_ref[...] = (acc + b_ref[...].astype(jnp.float32)).astype(o_ref.dtype)


def _linear_ksplit_kernel(x_ref, w_ref, b_ref, o_ref, acc_ref):
    # x_ref: (tm, tk), w_ref: (tn, tk), b_ref: (1, tn), acc_ref: (tm, tn) f32.
    k = pl.program_id(2)

    @pl.when(k == 0)
    def _():
        acc_ref[...] = jnp.zeros_like(acc_ref)

    acc_ref[...] += lax.dot_general(
        x_ref[...], w_ref[...],
        dimension_numbers=(((1,), (1,)), ((), ())),   # 'mk,nk->mn'
        preferred_element_type=jnp.float32,
    )

    @pl.when(k == pl.num_programs(2) - 1)
    def _():
        o_ref[...] = (acc_ref[...] + b_ref[...].astype(jnp.float32)).astype(o_ref.dtype)


def linear_forward(x, weight, bias, *,
                   tm_max=512, tn_max=512, tk_max=512,
                   vmem_budget_bytes=20 * 1024 * 1024,
                   vmem_limit_bytes=32 * 1024 * 1024):
    """Pallas equivalent of LinearRegressionTorch.forward(x) = self.linear(x).

    x:      (B, In)
    weight: (Out, In)   -- torch.nn.Linear.weight layout (NOT transposed)
    bias:   (Out,)
    returns (B, Out)
    """
    B, In = x.shape
    Out, In_w = weight.shape
    assert In == In_w and bias.shape == (Out,)

    # Degenerate / sub-tile shapes: XLA handles these with far less overhead than
    # padding In/Out up to 128 lanes would cost (demo case: In=1, Out=1).
    if In < 64 or Out < 64 or B * In * Out < 8 * 128 * 128:
        return x @ weight.T + bias

    itemsize = jnp.dtype(x.dtype).itemsize

    tm, Mp = _pick_tile(B, 8, tm_max, 64)
    tn, Np = _pick_tile(Out, 128, tn_max, 128)
    Kp = _round_up(In, 128)

    # Full-K fast path budget: double-buffered x/W/bias/out tiles, no acc scratch.
    bytes_full_k = (2 * (tm * Kp + tn * Kp + tn) + 2 * tm * tn) * itemsize
    full_k = bytes_full_k <= vmem_budget_bytes

    if full_k:
        tk = Kp
        # Give both v7x TensorCores work when the grid would otherwise be 1x1.
        if (Mp // tm) * (Np // tn) == 1 and tn >= 256:
            tn //= 2
    else:
        # tk divides round_up(In, 128): zero wasted K padding.
        tk, Kp = _pick_tile(In, 128, tk_max, 128)

    # Pad only the dims that actually need it (zero K padding is exact; padded
    # M rows / N cols are sliced off afterwards only when present).
    xp = x if (Mp == B and Kp == In) else jnp.pad(x, ((0, Mp - B), (0, Kp - In)))
    wp = weight if (Np == Out and Kp == In) else jnp.pad(
        weight, ((0, Np - Out), (0, Kp - In)))
    b2 = bias.reshape(1, Out)
    bp = b2 if Np == Out else jnp.pad(b2, ((0, 0), (0, Np - Out)))

    cost = pl.CostEstimate(
        flops=2 * Mp * Kp * Np,
        transcendentals=0,
        bytes_accessed=(Mp * Kp + Kp * Np + Np + Mp * Np) * itemsize,
    )

    if full_k:
        out_padded = pl.pallas_call(
            _linear_full_k_kernel,
            out_shape=jax.ShapeDtypeStruct((Mp, Np), x.dtype),
            grid=(Mp // tm, Np // tn),
            in_specs=[
                pl.BlockSpec((tm, Kp), lambda i, j: (i, 0)),   # x panel, reused over j
                pl.BlockSpec((tn, Kp), lambda i, j: (j, 0)),   # W (Out, In) panel
                pl.BlockSpec((1, tn), lambda i, j: (0, j)),    # bias tile
            ],
            out_specs=pl.BlockSpec((tm, tn), lambda i, j: (i, j)),
            compiler_params=pltpu.CompilerParams(
                dimension_semantics=("parallel", "parallel"),
                vmem_limit_bytes=vmem_limit_bytes,
            ),
            cost_estimate=cost,
        )(xp, wp, bp)
    else:
        out_padded = pl.pallas_call(
            _linear_ksplit_kernel,
            out_shape=jax.ShapeDtypeStruct((Mp, Np), x.dtype),
            grid=(Mp // tm, Np // tn, Kp // tk),               # K (reduction) last
            in_specs=[
                pl.BlockSpec((tm, tk), lambda i, j, k: (i, k)),  # x tile
                pl.BlockSpec((tn, tk), lambda i, j, k: (j, k)),  # W (Out, In) tile
                pl.BlockSpec((1, tn), lambda i, j, k: (0, j)),   # bias tile (j only)
            ],
            out_specs=pl.BlockSpec((tm, tn), lambda i, j, k: (i, j)),
            scratch_shapes=[pltpu.VMEM((tm, tn), jnp.float32)],
            compiler_params=pltpu.CompilerParams(
                dimension_semantics=("parallel", "parallel", "arbitrary"),
                vmem_limit_bytes=vmem_limit_bytes,
            ),
            cost_estimate=cost,
        )(xp, wp, bp)

    if Mp == B and Np == Out:
        return out_padded
    return out_padded[:B, :Out]


def _make_linear_params(key, in_features, out_features):
    k_w, k_b = jax.random.split(key)
    bound = 1.0 / jnp.sqrt(jnp.float32(in_features))
    weight = jax.random.uniform(k_w, (out_features, in_features),
                                minval=-bound, maxval=bound, dtype=jnp.float32)
    bias = jax.random.uniform(k_b, (out_features,),
                              minval=-bound, maxval=bound, dtype=jnp.float32)
    return weight, bias


if __name__ == "__main__":
    root = jax.random.PRNGKey(0)
    k1, k2, k3, kx1, kx2, kx3 = jax.random.split(root, 6)

    # --- Case 1: LinearRegressionTorch demo shape (input_size=1, output_size=1).
    # Sub-tile -> served by the XLA fast path.
    w1, b1 = _make_linear_params(k1, 1, 1)
    x1 = jax.random.normal(kx1, (8, 1), dtype=jnp.float32)
    out1 = jax.block_until_ready(linear_forward(x1, w1, b1))
    ref1 = x1 @ w1.T + b1
    assert out1.shape == (8, 1)
    assert jnp.allclose(out1, ref1, atol=1e-5, rtol=1e-5)

    # --- Case 2: multi-tile shape, full-K Pallas path (2-D grid, no K padding).
    B2, In2, Out2 = 256, 384, 256
    w2, b2 = _make_linear_params(k2, In2, Out2)
    x2 = jax.random.normal(kx2, (B2, In2), dtype=jnp.float32)
    out2 = jax.block_until_ready(linear_forward(x2, w2, b2))
    ref2 = x2 @ w2.T + b2
    assert out2.shape == (B2, Out2)
    assert jnp.allclose(out2, ref2, atol=1e-4, rtol=1e-4)

    # --- Case 3: force the K-split accumulator path (tight VMEM budget).
    B3, In3, Out3 = 128, 1024, 256
    w3, b3 = _make_linear_params(k3, In3, Out3)
    x3 = jax.random.normal(kx3, (B3, In3), dtype=jnp.float32)
    out3 = jax.block_until_ready(
        linear_forward(x3, w3, b3, vmem_budget_bytes=2 * 1024 * 1024))
    ref3 = x3 @ w3.T + b3
    assert out3.shape == (B3, Out3)
    assert jnp.allclose(out3, ref3, atol=1e-4, rtol=1e-4)

    print("KERNEL_OK")
</pallas_src>

<mosaic_0001>
module attributes {stable_mosaic.version = 11 : i64} {
  func.func @_linear_full_k_kernel(%arg0: i32, %arg1: i32, %arg2: memref<256x384xf32, #tpu.memory_space<vmem>>, %arg3: memref<128x384xf32, #tpu.memory_space<vmem>>, %arg4: memref<1x128xf32, #tpu.memory_space<vmem>>, %arg5: memref<256x128xf32, #tpu.memory_space<vmem>>) attributes {dimension_semantics = [#tpu.dimension_semantics<parallel>, #tpu.dimension_semantics<parallel>], iteration_bounds = array<i64: 1, 2>, scalar_prefetch = 0 : i64, scratch_operands = 0 : i64, tpu.core_type = #tpu.core_type<tc>, window_params = [{transform_indices = @transform_0, window_bounds = array<i64: 256, 384>}, {transform_indices = @transform_1, window_bounds = array<i64: 128, 384>}, {transform_indices = @transform_2, window_bounds = array<i64: 1, 128>}, {transform_indices = @transform_3, window_bounds = array<i64: 256, 128>}]} {
    %c0 = arith.constant 0 : index
    %c0_0 = arith.constant 0 : index
    %0 = vector.load %arg2[%c0, %c0_0] : memref<256x384xf32, #tpu.memory_space<vmem>>, vector<256x384xf32>
    %c0_1 = arith.constant 0 : index
    %c0_2 = arith.constant 0 : index
    %1 = vector.load %arg3[%c0_1, %c0_2] : memref<128x384xf32, #tpu.memory_space<vmem>>, vector<128x384xf32>
    %cst = arith.constant dense<0.000000e+00> : vector<256x128xf32>
    %2 = tpu.matmul %0, %1, %cst {dimension_numbers = #tpu.dot_dimension_numbers<[1], [1], [0], [0], [0, 0, 1, 0], [], []>} : vector<256x384xf32>, vector<128x384xf32>, vector<256x128xf32> -> vector<256x128xf32>
    %c0_3 = arith.constant 0 : index
    %c0_4 = arith.constant 0 : index
    %3 = vector.load %arg4[%c0_3, %c0_4] : memref<1x128xf32, #tpu.memory_space<vmem>>, vector<1x128xf32>
    %4 = vector.broadcast %3 : vector<1x128xf32> to vector<256x128xf32>
    %5 = arith.addf %2, %4 : vector<256x128xf32>
    %c0_5 = arith.constant 0 : index
    %c0_6 = arith.constant 0 : index
    %6 = vector.load %arg5[%c0_5, %c0_6] : memref<256x128xf32, #tpu.memory_space<vmem>>, vector<256x128xf32>
    tpu.vector_store %arg5[%c0_5, %c0_6], %5 {strides = array<i32>} : memref<256x128xf32, #tpu.memory_space<vmem>>, vector<256x128xf32>,
    return
  }
  func.func @transform_0(%arg0: i32, %arg1: i32) -> (i32, i32) {
    %c0_i32 = arith.constant 0 : i32
    %c0_i32_0 = arith.constant 0 : i32
    return %arg0, %c0_i32 : i32, i32
  }
  func.func @transform_1(%arg0: i32, %arg1: i32) -> (i32, i32) {
    %c0_i32 = arith.constant 0 : i32
    %c0_i32_0 = arith.constant 0 : i32
    return %arg1, %c0_i32 : i32, i32
  }
  func.func @transform_2(%arg0: i32, %arg1: i32) -> (i32, i32) {
    %c0_i32 = arith.constant 0 : i32
    %c0_i32_0 = arith.constant 0 : i32
    return %c0_i32, %arg1 : i32, i32
  }
  func.func @transform_3(%arg0: i32, %arg1: i32) -> (i32, i32) {
    %c0_i32 = arith.constant 0 : i32
    return %arg0, %arg1 : i32, i32
  }
}

</mosaic_0001>

<bundles_post_ra>
// kernel: tpu_custom_call.1
= control target key start
LH: loop header
LB: loop body
LE: loop exit
PB: predicated region body
PF: predicated region fallthrough
CT: control target
= control target key end

     0   :  { %8 = vsyncpa [#allocation3], 0  ;;  %s1843_s0 = inlined_call_operand.hbm [shape: f32[256,384], index: 0, kind: input, shape index: {}]   ;;  %s1844_s1 = inlined_call_operand.hbm [shape: f32[256,384], index: 1, kind: input, shape index: {}]   ;;  %s1845_s2 = inlined_call_operand.vmem [shape: f32[1,256], index: 2, kind: input, shape index: {}]   ;;  %s1846_s3 = inlined_call_operand.hbm [shape: f32[256,256], index: 3, kind: output, shape index: {}]  }
   0x1   :  { %9 = vsyncpa [#allocation6], 0 }
   0x2   :  { %11 = vsyncpa [#allocation6 + $0x1], 0 }
   0x3   :  { %12 = vsyncpa [#allocation4], 0 }
   0x4   :  { %14 = vsyncpa [#allocation4 + $0x1], 0  ;;  %s1463_s12 = smov 0   ;;  %s1465_s13 = smov 0  }
   0x5   :  { %s1467_s14 = smov 0   ;;  %s1469_s15 = smov 0  }
   0x6   :  { %s1471_s16 = smov 0   ;;  %s1473_s17 = smov 0  }
   0x7 LB: > { %s1000_s18 = sadd.s32 4294967295, %s1433_s17   ;;  %s1001_s19 = sadd.s32 4294967294, %s1433_s17   ;;  %s1433_s17 = sphi %s1473_s17, %s20_s17   ;;  %s1429_s16 = sphi %s1471_s16, %s1869_s16   ;;  %s1425_s15 = sphi %s1469_s15, %s1868_s15   ;;  %s1421_s14 = sphi %s1467_s14, %s1867_s14   ;;  %s1417_s13 = sphi %s1465_s13, %s1866_s13   ;;  %s1413_s12 = sphi %s1463_s12, %s1865_s12  }
   0x8   : > { %p78_p0 = scmp.ne.s32.totalorder %s1417_s13, %s1413_s12  ;;  %p1497_p1 = scmp.eq.s32.totalorder %s1000_s18, 0 }
   0x9   : > { %p1501_p2 = scmp.eq.s32.totalorder %s1000_s18, 1  ;;  %p136_p3 = scmp.eq.s32.totalorder %s1001_s19, 1 }
   0xa   : > { %s1851_s20 = scalar_select %p1497_p1, 1, 0 }
   0xb   : > { %s1852_s21 = scalar_select %p1501_p2, 1, 0 }
   0xc   : > { %p1507_p4 = por %p1497_p1, %p78_p0  ;;  %p1002_p5 = scmp.ge.s32.totalorder %s1433_s17, 1 }
   0xd   : > { %p1512_p6 = por %p136_p3, %p78_p0  ;;  %p143_p7 = scmp.lt.s32.totalorder %s1433_s17, 3 }
   0xe   : > { %s1853_s22 = scalar_select %p1507_p4, 1, 0 }
   0xf   : > { %s1854_s23 = scalar_select %p1512_p6, 1, 0 }
  0x10   : > { %p1517_p8 = pnand %p1002_p5, %p143_p7  ;;  %s1435_s25 = smov [#allocation2]  }
  0x11   : > { %s159_s26 = sshll.u32 %s1435_s25, 4  ;;  %s29_s28 = sadd.s32 1, %s1429_s16  ;;  %s160_s26 = int_to_ptr.vmem [resolvable:$true] %s159_s26 }
  0x12   : > { %s1855_s24 = scalar_select %p1517_p8, 1, 0 }
  0x13   : > { %p1219_p9 = pneg %p1517_p8  ;;  %s1289_s4 = scalar_lea.hbm %s1843_s0, 12288 }
  0x14   : > { %p1290_p12 = scmp.ne.s32.totalorder %s1843_s0, %s1289_s4  ;;  %p1296_p5 = scmp.lt.u32.totalorder %s1289_s4, %s1843_s0 }
  0x15   : > { %p1526_p11 = pnand %p1219_p9, %p1497_p1 }
  0x17   : > { %p1291_p13 = pneg %p1526_p11 }
  0x19   : > { %p1292_p0 = pnand %p1291_p13, %p1290_p12 }
  0x1b   : > { %p1293_p3 = pneg %p1292_p0 }
  0x1d   : > { %p1298_p7 = pnand %p1296_p5, %p1293_p3 }
  0x1f   : > { %1301 = shalt.err (!%p1298_p7)
}
  0x20   : > { %s1302_s9 = scalar_lea.vmem %s160_s26, 12288  ;;  %p1310_p4 = scmp.lt.s32.totalorder %s160_s26, %s160_s26 }
  0x21   : > { %p1303_p9 = scmp.ne.s32.totalorder %s160_s26, %s1302_s9  ;;  %p1311_p1 = scmp.lt.s32.totalorder %s1302_s9, %s1302_s9 }
  0x23   : > { %p1305_p10 = pnand %p1303_p9, %p1291_p13  ;;  %p1312_p8 = por %p1311_p1, %p1310_p4 }
  0x25   : > { %p1306_p6 = pneg %p1305_p10 }
  0x27   : > { %p1313_p2 = pnand %p1312_p8, %p1306_p6 }
  0x29   : > { %1316 = shalt.err (!%p1313_p2)
}
  0x2a   : > { %s1436_s10 = smov 384   ;;  %s1437_s11 = smov 24  }
  0x2b   : > { %1222 = dma.hbm_to_vmem [thread:$0]  (!%p1526_p11), %s1843_s0, 12288, %s160_s26, [#allocation3], %s1436_s10, %s1436_s10, %s1437_s11  }
  0x2c   : > { %p30_p1 = scmp.ge.s32.totalorder %s29_s28, 2  ;;  %s65_s25 = sadd.s32 1, %s1421_s14 }
  0x2d   : > { %p72_p2 = scmp.ne.s32.totalorder %s1421_s14, %s1417_s13  ;;  %p73_p4 = scmp.eq.s32.totalorder %s1433_s17, 0 }
  0x2e   : > { %s1871_s28 = smov (%p30_p1, %s29_s28), 0  ;;  %p1857_p8 = scmp.ne.s32.totalorder %s1852_s21, 0 }
  0x2f   : > { %p74_p6 = por %p73_p4, %p72_p2  ;;  %s62_s27 = ssub.s32 %s1429_s16, %s1871_s28 }
  0x30   : > { %p1558_p10 = por %p1857_p8, %p72_p2  ;;  %p1232_p12 = scmp.lt.s32.totalorder %s1433_s17, 2 }
  0x31   : > { %p63_p13 = scmp.eq.s32.totalorder %s62_s27, 0  ;;  %s173_s30 = sand.u32 1, %s1421_s14  }
  0x32   : > { %s1208_s4 = smul.u32 384, %s173_s30  ;;  %p1570_p11 = pnand %p1232_p12, %p74_p6 }
  0x33   : > { %s1567_s5 = scalar_select %p63_p13, %s1421_s14, %s65_s25  }
  0x34   : > { %s1209_s26 = smul.u32 6144, %s1429_s16  ;;  %s177_s6 = scalar_lea.vmem [#allocation5], %s1208_s4 }
  0x35   : > { %s185_s7 = sshll.u32 %s177_s6, 4  ;;  %s1581_s19 = scalar_lea.sflag [#allocation6], %s173_s30  ;;  %s1579_s7 = int_to_ptr.vmem [resolvable:$true] %s185_s7 }
  0x36   : > { %s1577_s18 = scalar_lea.hbm %s1844_s1, %s1209_s26  ;;  %p1319_p3 = pneg %p1570_p11 }
  0x37   : > { %s1317_s25 = scalar_lea.hbm %s1577_s18, 6144  ;;  %s1322_s26 = scalar_lea.hbm %s1844_s1, 12288 }
  0x38   : > { %p1318_p0 = scmp.ne.s32.totalorder %s1577_s18, %s1317_s25  ;;  %p1323_p9 = scmp.lt.u32.totalorder %s1577_s18, %s1844_s1 }
  0x39   : > { %p1324_p1 = scmp.lt.u32.totalorder %s1322_s26, %s1317_s25  ;;  %p1326_p4 = scmp.lt.u32.totalorder %s1317_s25, %s1577_s18 }
  0x3a   : > { %p1320_p5 = pnand %p1319_p3, %p1318_p0 }
  0x3b   : > { %p1325_p2 = por %p1324_p1, %p1323_p9 }
  0x3c   : > { %p1321_p7 = pneg %p1320_p5 }
  0x3d   : > { %p1327_p6 = por %p1326_p4, %p1325_p2 }
  0x3f   : > { %p1328_p8 = pnand %p1327_p6, %p1321_p7 }
  0x41   : > { %1331 = shalt.err (!%p1328_p8)
}
  0x42   : > { %s1332_s30 = scalar_lea.vmem %s1579_s7, 6144  ;;  %s1438_s21 = smov [#allocation5]  }
  0x43   : > { %p1333_p12 = scmp.ne.s32.totalorder %s1579_s7, %s1332_s30  ;;  %s1337_s27 = sshll.u32 %s1438_s21, 4  ;;  %s1338_s27 = int_to_ptr.vmem [resolvable:$false] %s1337_s27 }
  0x44   : > { %s1339_s4 = scalar_lea.vmem %s1338_s27, 12288  ;;  %p1340_p5 = scmp.lt.s32.totalorder %s1579_s7, %s1338_s27 }
  0x45   : > { %p1335_p13 = pnand %p1333_p12, %p1319_p3  ;;  %p1341_p9 = scmp.lt.s32.totalorder %s1339_s4, %s1332_s30 }
  0x47   : > { %p1336_p0 = pneg %p1335_p13  ;;  %p1342_p1 = por %p1341_p9, %p1340_p5 }
  0x49   : > { %p1343_p2 = pnand %p1342_p1, %p1336_p0 }
  0x4b   : > { %1346 = shalt.err (!%p1343_p2)
}
  0x4c   : > { %1226 = dma.hbm_to_vmem [thread:$0]  (!%p1570_p11), %s1577_s18, 6144, %s1579_s7, %s1581_s19, %s1436_s10, %s1436_s10, %s1437_s11  }
  0x4d   : > { %p1860_p3 = scmp.ne.s32.totalorder %s1855_s24, 0 }
  0x4e   : > { %p1861_p7 = scmp.ne.s32.totalorder (!%p1860_p3), %s1851_s20, 0 }
  0x4f   : > { %203 = sbr.rel (%p1860_p3) target bundleno = 515 (0x203), region = 32 }
  0x56   : > { %1400 = dma.done.wait (%p1861_p7), [#allocation3], 12288  }
  0x57   : > { %1402 = vsyncadd (%p1861_p7), [#allocation3], 4294955008  ;;  %s1619_s25 = sand.u32 1, %s1417_s13   ;;  %p1862_p11 = scmp.ne.s32.totalorder %s1853_s22, 0 }
  0x58   : > { %s1210_s8 = smul.u32 384, %s1619_s25  ;;  %s210_s26 = scalar_lea.sflag [#allocation6], %s1619_s25 }
  0x5a   : > { %s1623_s6 = scalar_lea.vmem [#allocation5], %s1210_s8 }
  0x5b   : > { %1404 = dma.done.wait (%p1862_p11), %s210_s26, 6144  }
  0x5c   : > { %1406 = vsyncadd (%p1862_p11), %s210_s26, 4294961152  ;;  %v342_v0 = vld [vmem:[%s1623_s6 + $0x8] sm:$0xff]  ;;  %v345_v1 = vld [vmem:[%s1623_s6 + $0x20] sm:$0xff]  ;;  %p241_p4 = scmp.lt.s32.totalorder %s1425_s15, 1  ;;  %s1010_s11 = sshll.u32 %s1619_s25, 8 }
  0x5d   : > { %v341_v2 = vld [vmem:[%s1623_s6] sm:$0xff]  ;;  %v1144_v3 = vpack.c.bf16 %v345_v1, %v342_v0  ;;  %v344_v4 = vld [vmem:[%s1623_s6 + $0x18] sm:$0xff]  ;;  %v343_v5 = vld [vmem:[%s1623_s6 + $0x10] sm:$0xff]  ;;  %s1686_s7 = scalar_lea.vmem [#allocation7], %s1010_s11  ;;  %s1013_s18 = sshll.u32 %s1425_s15, 7 }
  0x5e   : > { %v346_v6 = vld [vmem:[%s1623_s6 + $0x28] sm:$0xff]  ;;  %v1146_v7 = vpack.c.bf16 %v344_v4, %v341_v2  ;;  %v348_v9 = vld [vmem:[%s1623_s6 + $0x38] sm:$0xff]  ;;  %v351_v10 = vld [vmem:[%s1623_s6 + $0x50] sm:$0xff]  ;;  %s242_s20 = scalar_select %p241_p4, %s1425_s15, 1 }
  0x5f   : > { %v1176_v8 = vpack.c.bf16 %v346_v6, %v343_v5  ;;  %1145 = vmatprep.subr.bf16.mxu0 %v1144_v3  ;;  %v1148_v11 = vpack.c.bf16 %v351_v10, %v348_v9  ;;  %v349_v12 = vld [vmem:[%s1623_s6 + $0x40] sm:$0xff]  ;;  %v352_v13 = vld [vmem:[%s1623_s6 + $0x58] sm:$0xff]  ;;  %v347_v15 = vld [vmem:[%s1623_s6 + $0x30] sm:$0xff]  ;;  %s894_s19 = sshll.u32 %s1686_s7, 4  ;;  %s1790_s21 = scalar_lea.hbm %s1846_s3, %s1013_s18  ;;  %s1792_s19 = int_to_ptr.vmem [resolvable:$true] %s894_s19 }
  0x60   : > { %1147 = vmatpush1.bf16.xpose.msra.mxu0 %v1146_v7  ;;  %v1180_v14 = vpack.c.bf16 %v352_v13, %v349_v12  ;;  %v350_v16 = vld [vmem:[%s1623_s6 + $0x48] sm:$0xff]  ;;  %v357_v18 = vld [vmem:[%s1623_s6 + $0x80] sm:$0xff]  ;;  %v355_v19 = vld [vmem:[%s1623_s6 + $0x70] sm:$0xff]  ;;  %s243_s10 = scalar_lea.vmem %s1845_s2, %s242_s20  ;;  %s879_s15 = scalar_lea.sflag [#allocation4], %s1619_s25 }
  0x61   : > { %1177 = vmatprep.subr.bf16.mxu1 %v1176_v8  ;;  %1149 = vmatprep.subr.bf16.mxu0 %v1148_v11  ;;  %v354_v17 = vld [vmem:[%s1623_s6 + $0x68] sm:$0xff]  ;;  %v1150_v21 = vpack.c.bf16 %v350_v16, %v347_v15  ;;  %v353_v24 = vld [vmem:[%s1623_s6 + $0x60] sm:$0xff]  ;;  %v356_v25 = vld [vmem:[%s1623_s6 + $0x78] sm:$0xff]  ;;  %s1347_s27 = scalar_lea.vmem %s1792_s19, 4096  ;;  %s1439_s4 = smov [#allocation7]  }
  0x62   : > { %1179 = vmatpush3.bf16.xpose.msra.mxu1 %v1176_v8  ;;  %v358_v20 = vld [vmem:[%s1623_s6 + $0x88] sm:$0xff]  ;;  %v1152_v22 = vpack.c.bf16 %v357_v18, %v354_v17  ;;  %v360_v26 = vld [vmem:[%s1623_s6 + $0x98] sm:$0xff]  ;;  %v363_v27 = vld [vmem:[%s1623_s6 + $0xb0] sm:$0xff]  ;;  %v1154_v30 = vpack.c.bf16 %v356_v25, %v353_v24  ;;  %p1348_p6 = scmp.ne.s32.totalorder %s1792_s19, %s1347_s27  ;;  %s1351_s8 = sshll.u32 %s1439_s4, 4  ;;  %s1352_s8 = int_to_ptr.vmem [resolvable:$false] %s1351_s8 }
  0x63   : > { %1181 = vmatprep.subr.bf16.mxu1 %v1180_v14  ;;  %v1184_v23 = vpack.c.bf16 %v358_v20, %v355_v19  ;;  %v361_v28 = vld [vmem:[%s1623_s6 + $0xa0] sm:$0xff]  ;;  %v364_v29 = vld [vmem:[%s1623_s6 + $0xb8] sm:$0xff]  ;;  %v246_v31 = vld [vmem:[#allocation2 + $0x8] sm:$0xff]  ;;  %v1156_v33 = vpack.c.bf16 %v363_v27, %v360_v26  ;;  %s1353_s26 = scalar_lea.vmem %s1352_s8, 8192  ;;  %p1354_p13 = scmp.lt.s32.totalorder %s1792_s19, %s1352_s8 }
  0x64   : > { %v247_v32 = vld [vmem:[#allocation2 + $0x10] sm:$0xff]  ;;  %460 = vmatprep.mubr.f32.mxu0 %v246_v31  ;;  %v1188_v34 = vpack.c.bf16 %v364_v29, %v361_v28  ;;  %v362_v36 = vld [vmem:[%s1623_s6 + $0xa8] sm:$0xff]  ;;  %v369_v38 = vld [vmem:[%s1623_s6 + $0xe0] sm:$0xff]  ;;  %p1349_p8 = pnand %p1348_p6, %p1558_p10  ;;  %p1355_p0 = scmp.lt.s32.totalorder %s1353_s26, %s1347_s27 }
  0x65   : > { %1096 = vmatprep.mubr.f32.mxu1 %v247_v32  ;;  %v359_v35 = vld [vmem:[%s1623_s6 + $0x90] sm:$0xff]  ;;  %v366_v37 = vld [vmem:[%s1623_s6 + $0xc8] sm:$0xff]  ;;  %v365_v44 = vld [vmem:[%s1623_s6 + $0xc0] sm:$0xff] }
  0x66   : > { %v367_v39 = vld [vmem:[%s1623_s6 + $0xd0] sm:$0xff]  ;;  %v370_v40 = vld [vmem:[%s1623_s6 + $0xe8] sm:$0xff]  ;;  %v1158_v41 = vpack.c.bf16 %v362_v36, %v359_v35  ;;  %v1160_v42 = vpack.c.bf16 %v369_v38, %v366_v37  ;;  %v368_v45 = vld [vmem:[%s1623_s6 + $0xd8] sm:$0xff]  ;;  %p1350_p12 = pneg %p1349_p8  ;;  %p1356_p5 = por %p1355_p0, %p1354_p13 }
  0x67   : > { %v1192_v43 = vpack.c.bf16 %v370_v40, %v367_v39  ;;  %v372_v46 = vld [vmem:[%s1623_s6 + $0xf8] sm:$0xff]  ;;  %v375_v47 = vld [vmem:[%s1623_s6 + $0x110] sm:$0xff]  ;;  %v373_v48 = vld [vmem:[%s1623_s6 + $0x100] sm:$0xff]  ;;  %v1162_v50 = vpack.c.bf16 %v368_v45, %v365_v44 }
  0x68   : > { %1151 = vmatpush1.bf16.xpose.msra.mxu0 %v1150_v21  ;;  %v376_v49 = vld [vmem:[%s1623_s6 + $0x118] sm:$0xff]  ;;  %v1164_v51 = vpack.c.bf16 %v375_v47, %v372_v46  ;;  %v371_v53 = vld [vmem:[%s1623_s6 + $0xf0] sm:$0xff]  ;;  %v374_v54 = vld [vmem:[%s1623_s6 + $0x108] sm:$0xff]  ;;  %p1357_p9 = pnand %p1356_p5, %p1350_p12 }
  0x69   : > { %1153 = vmatprep.subr.bf16.mxu0 %v1152_v22  ;;  %v1196_v52 = vpack.c.bf16 %v376_v49, %v373_v48  ;;  %v378_v55 = vld [vmem:[%s1623_s6 + $0x128] sm:$0xff]  ;;  %v381_v56 = vld [vmem:[%s1623_s6 + $0x140] sm:$0xff]  ;;  %v379_v57 = vld [vmem:[%s1623_s6 + $0x130] sm:$0xff]  ;;  %v1166_v59 = vpack.c.bf16 %v374_v54, %v371_v53 }
  0x6a   : > { %1183 = vmatpush3.bf16.xpose.msra.mxu1 %v1180_v14  ;;  %v382_v58 = vld [vmem:[%s1623_s6 + $0x148] sm:$0xff]  ;;  %v1168_v60 = vpack.c.bf16 %v381_v56, %v378_v55  ;;  %v377_v62 = vld [vmem:[%s1623_s6 + $0x120] sm:$0xff]  ;;  %v380_v63 = vld [vmem:[%s1623_s6 + $0x138] sm:$0xff] }
  0x6b   : > { %1185 = vmatprep.subr.bf16.mxu1 %v1184_v23  ;;  %v1200_v61 = vpack.c.bf16 %v382_v58, %v379_v57  ;;  %v384_v0 = vld [vmem:[%s1623_s6 + $0x158] sm:$0xff]  ;;  %v387_v1 = vld [vmem:[%s1623_s6 + $0x170] sm:$0xff]  ;;  %v385_v2 = vld [vmem:[%s1623_s6 + $0x160] sm:$0xff]  ;;  %v1170_v4 = vpack.c.bf16 %v380_v63, %v377_v62 }
  0x6c   : > { %v388_v3 = vld [vmem:[%s1623_s6 + $0x178] sm:$0xff]  ;;  %v1172_v5 = vpack.c.bf16 %v387_v1, %v384_v0  ;;  %v383_v7 = vld [vmem:[%s1623_s6 + $0x150] sm:$0xff]  ;;  %v386_v8 = vld [vmem:[%s1623_s6 + $0x168] sm:$0xff] }
  0x6d   : > { %v1204_v6 = vpack.c.bf16 %v388_v3, %v385_v2  ;;  %v1174_v9 = vpack.c.bf16 %v386_v8, %v383_v7  ;;  %v245_v10 = vld [vmem:[#allocation2] sm:$0xff]  ;;  %v250_v11 = vld [vmem:[#allocation2 + $0x28] sm:$0xff]  ;;  %v248_v14 = vld [vmem:[#allocation2 + $0x18] sm:$0xff] }
  0x6e   : > { %v249_v12 = vld [vmem:[#allocation2 + $0x20] sm:$0xff]  ;;  %v252_v15 = vld [vmem:[#allocation2 + $0x38] sm:$0xff]  ;;  %v259_v17 = vld [vmem:[#allocation2 + $0x70] sm:$0xff] }
  0x6f   : > { %v253_v13 = vld [vmem:[#allocation2 + $0x40] sm:$0xff]  ;;  %v256_v16 = vld [vmem:[#allocation2 + $0x58] sm:$0xff]  ;;  %v251_v18 = vld [vmem:[#allocation2 + $0x30] sm:$0xff] }
  0x70   : > { %1155 = vmatpush1.bf16.xpose.msra.mxu0 %v1154_v30  ;;  %v255_v19 = vld [vmem:[#allocation2 + $0x50] sm:$0xff]  ;;  %v262_v20 = vld [vmem:[#allocation2 + $0x88] sm:$0xff]  ;;  %v265_v21 = vld [vmem:[#allocation2 + $0xa0] sm:$0xff] }
  0x71   : > { %1157 = vmatprep.subr.bf16.mxu0 %v1156_v33  ;;  %v254_v22 = vld [vmem:[#allocation2 + $0x48] sm:$0xff]  ;;  %v268_v24 = vld [vmem:[#allocation2 + $0xb8] sm:$0xff]  ;;  %v271_v25 = vld [vmem:[#allocation2 + $0xd0] sm:$0xff] }
  0x72   : > { %1187 = vmatpush3.bf16.xpose.msra.mxu1 %v1184_v23  ;;  %v258_v23 = vld [vmem:[#allocation2 + $0x68] sm:$0xff]  ;;  %v257_v26 = vld [vmem:[#allocation2 + $0x60] sm:$0xff]  ;;  %v260_v30 = vld [vmem:[#allocation2 + $0x78] sm:$0xff] }
  0x73   : > { %1189 = vmatprep.subr.bf16.mxu1 %v1188_v34  ;;  %v261_v27 = vld [vmem:[#allocation2 + $0x80] sm:$0xff]  ;;  %v274_v28 = vld [vmem:[#allocation2 + $0xe8] sm:$0xff]  ;;  %v264_v31 = vld [vmem:[#allocation2 + $0x98] sm:$0xff] }
  0x74   : > { %v277_v29 = vld [vmem:[#allocation2 + $0x100] sm:$0xff]  ;;  %v280_v32 = vld [vmem:[#allocation2 + $0x118] sm:$0xff]  ;;  %v283_v33 = vld [vmem:[#allocation2 + $0x130] sm:$0xff] }
  0x75   : > { %v267_v35 = vld [vmem:[#allocation2 + $0xb0] sm:$0xff]  ;;  %v286_v36 = vld [vmem:[#allocation2 + $0x148] sm:$0xff]  ;;  %v289_v37 = vld [vmem:[#allocation2 + $0x160] sm:$0xff] }
  0x76   : > { %v266_v38 = vld [vmem:[#allocation2 + $0xa8] sm:$0xff]  ;;  %v292_v40 = vld [vmem:[#allocation2 + $0x178] sm:$0xff]  ;;  %v301_v45 = vld [vmem:[#allocation2 + $0x1c0] sm:$0xff] }
  0x77   : > { %v270_v39 = vld [vmem:[#allocation2 + $0xc8] sm:$0xff]  ;;  %v272_v46 = vld [vmem:[#allocation2 + $0xd8] sm:$0xff]  ;;  %v307_v49 = vld [vmem:[#allocation2 + $0x1f0] sm:$0xff] }
  0x78   : > { %1159 = vmatpush1.bf16.xpose.msra.mxu0 %v1158_v41  ;;  %v295_v41 = vld [vmem:[#allocation2 + $0x190] sm:$0xff]  ;;  %v298_v44 = vld [vmem:[#allocation2 + $0x1a8] sm:$0xff]  ;;  %v276_v47 = vld [vmem:[#allocation2 + $0xf8] sm:$0xff] }
  0x79   : > { %1161 = vmatprep.subr.bf16.mxu0 %v1160_v42  ;;  %v269_v42 = vld [vmem:[#allocation2 + $0xc0] sm:$0xff]  ;;  %v304_v48 = vld [vmem:[#allocation2 + $0x1d8] sm:$0xff]  ;;  %v278_v54 = vld [vmem:[#allocation2 + $0x108] sm:$0xff] }
  0x7a   : > { %1191 = vmatpush3.bf16.xpose.msra.mxu1 %v1188_v34  ;;  %v263_v34 = vld [vmem:[#allocation2 + $0x90] sm:$0xff]  ;;  %v313_v53 = vld [vmem:[#allocation2 + $0x220] sm:$0xff]  ;;  %v282_v55 = vld [vmem:[#allocation2 + $0x128] sm:$0xff] }
  0x7b   : > { %1193 = vmatprep.subr.bf16.mxu1 %v1192_v43  ;;  %v316_v56 = vld [vmem:[#allocation2 + $0x238] sm:$0xff]  ;;  %v319_v57 = vld [vmem:[#allocation2 + $0x250] sm:$0xff]  ;;  %v281_v58 = vld [vmem:[#allocation2 + $0x120] sm:$0xff] }
  0x7c   : > { %v284_v62 = vld [vmem:[#allocation2 + $0x138] sm:$0xff]  ;;  %v331_v1 = vld [vmem:[#allocation2 + $0x2b0] sm:$0xff]  ;;  %v294_v7 = vld [vmem:[#allocation2 + $0x188] sm:$0xff] }
  0x7d   : > { %v288_v63 = vld [vmem:[#allocation2 + $0x158] sm:$0xff]  ;;  %v287_v2 = vld [vmem:[#allocation2 + $0x150] sm:$0xff] }
  0x7e   : > { %v328_v0 = vld [vmem:[#allocation2 + $0x298] sm:$0xff]  ;;  %v291_v3 = vld [vmem:[#allocation2 + $0x170] sm:$0xff] }
  0x7f   : > { %v340_v8 = vld [vmem:[#allocation2 + $0x2f8] sm:$0xff] }
  0x80   : > { %1163 = vmatpush1.bf16.xpose.msra.mxu0 %v1162_v50  ;;  %v275_v50 = vld [vmem:[#allocation2 + $0xf0] sm:$0xff] }
  0x81   : > { %1165 = vmatprep.subr.bf16.mxu0 %v1164_v51  ;;  %v279_v51 = vld [vmem:[#allocation2 + $0x110] sm:$0xff] }
  0x82   : > { %1195 = vmatpush3.bf16.xpose.msra.mxu1 %v1192_v43  ;;  %v273_v43 = vld [vmem:[#allocation2 + $0xe0] sm:$0xff] }
  0x83   : > { %1197 = vmatprep.subr.bf16.mxu1 %v1196_v52 }
  0x88   : > { %1167 = vmatpush1.bf16.xpose.msra.mxu0 %v1166_v59  ;;  %v285_v59 = vld [vmem:[#allocation2 + $0x140] sm:$0xff] }
  0x89   : > { %1169 = vmatprep.subr.bf16.mxu0 %v1168_v60  ;;  %v322_v60 = vld [vmem:[#allocation2 + $0x268] sm:$0xff] }
  0x8a   : > { %1199 = vmatpush3.bf16.xpose.msra.mxu1 %v1196_v52  ;;  %v310_v52 = vld [vmem:[#allocation2 + $0x208] sm:$0xff] }
  0x8b   : > { %1201 = vmatprep.subr.bf16.mxu1 %v1200_v61 }
  0x90   : > { %1171 = vmatpush1.bf16.xpose.msra.mxu0 %v1170_v4  ;;  %v334_v4 = vld [vmem:[#allocation2 + $0x2c8] sm:$0xff] }
  0x91   : > { %1173 = vmatprep.subr.bf16.mxu0 %v1172_v5  ;;  %v337_v5 = vld [vmem:[#allocation2 + $0x2e0] sm:$0xff] }
  0x92   : > { %1203 = vmatpush3.bf16.xpose.msra.mxu1 %v1200_v61  ;;  %v325_v61 = vld [vmem:[#allocation2 + $0x280] sm:$0xff] }
  0x93   : > { %1205 = vmatprep.subr.bf16.mxu1 %v1204_v6 }
  0x98   : > { %1175 = vmatpush1.bf16.xpose.msra.mxu0 %v1174_v9  ;;  %v293_v9 = vld [vmem:[#allocation2 + $0x180] sm:$0xff] }
  0x9a   : > { %1207 = vmatpush3.bf16.xpose.msra.mxu1 %v1204_v6  ;;  %v290_v6 = vld [vmem:[#allocation2 + $0x168] sm:$0xff] }
  0x9f   : > { %461 = vmatmul.mubr.f32.vlgmr.msra.gmra.mrb[0].mxu0 %v245_v10  ;;  %v297_v10 = vld [vmem:[#allocation2 + $0x1a0] sm:$0xff] }
  0xa0   : > { %465 = vmatprep.mubr.f32.mxu0 %v249_v12  ;;  %v300_v12 = vld [vmem:[#allocation2 + $0x1b8] sm:$0xff] }
  0xa1   : > { %1097 = vmatmul.mubr.f32.vlgmr.msra.gmra.mrb[0].mxu1 %v250_v11  ;;  %v296_v11 = vld [vmem:[#allocation2 + $0x198] sm:$0xff] }
  0xa2   : > { %1099 = vmatprep.mubr.f32.mxu1 %v253_v13  ;;  %v299_v13 = vld [vmem:[#allocation2 + $0x1b0] sm:$0xff] }
  0xa3   : > { %466 = vmatmul.mubr.f32.gmra.mrb[2].mxu0 %v248_v14  ;;  %v303_v14 = vld [vmem:[#allocation2 + $0x1d0] sm:$0xff] }
  0xa4   : > { %470 = vmatprep.mubr.f32.mxu0 %v252_v15  ;;  %v302_v15 = vld [vmem:[#allocation2 + $0x1c8] sm:$0xff] }
  0xa5   : > { %1100 = vmatmul.mubr.f32.gmra.mrb[2].mxu1 %v256_v16  ;;  %v306_v16 = vld [vmem:[#allocation2 + $0x1e8] sm:$0xff] }
  0xa6   : > { %1102 = vmatprep.mubr.f32.mxu1 %v259_v17  ;;  %v305_v17 = vld [vmem:[#allocation2 + $0x1e0] sm:$0xff] }
  0xa7   : > { %471 = vmatmul.mubr.f32.gmra.mrb[4].mxu0 %v251_v18  ;;  %v309_v18 = vld [vmem:[#allocation2 + $0x200] sm:$0xff] }
  0xa8   : > { %475 = vmatprep.mubr.f32.mxu0 %v255_v19  ;;  %v308_v19 = vld [vmem:[#allocation2 + $0x1f8] sm:$0xff] }
  0xa9   : > { %1103 = vmatmul.mubr.f32.gmra.mrb[4].mxu1 %v262_v20  ;;  %v312_v20 = vld [vmem:[#allocation2 + $0x218] sm:$0xff] }
  0xaa   : > { %1105 = vmatprep.mubr.f32.mxu1 %v265_v21  ;;  %v311_v21 = vld [vmem:[#allocation2 + $0x210] sm:$0xff] }
  0xab   : > { %476 = vmatmul.mubr.f32.gmra.mrb[6].mxu0 %v254_v22  ;;  %v315_v22 = vld [vmem:[#allocation2 + $0x230] sm:$0xff] }
  0xac   : > { %480 = vmatprep.mubr.f32.mxu0 %v258_v23  ;;  %v314_v23 = vld [vmem:[#allocation2 + $0x228] sm:$0xff] }
  0xad   : > { %1106 = vmatmul.mubr.f32.gmra.mrb[6].mxu1 %v268_v24  ;;  %v318_v24 = vld [vmem:[#allocation2 + $0x248] sm:$0xff] }
  0xae   : > { %1108 = vmatprep.mubr.f32.mxu1 %v271_v25  ;;  %v317_v25 = vld [vmem:[#allocation2 + $0x240] sm:$0xff] }
  0xaf   : > { %481 = vmatmul.mubr.f32.gmra.mrb[8].mxu0 %v257_v26  ;;  %v321_v26 = vld [vmem:[#allocation2 + $0x260] sm:$0xff] }
  0xb0   : > { %485 = vmatprep.mubr.f32.mxu0 %v261_v27  ;;  %v320_v27 = vld [vmem:[#allocation2 + $0x258] sm:$0xff] }
  0xb1   : > { %1109 = vmatmul.mubr.f32.gmra.mrb[8].mxu1 %v274_v28  ;;  %v324_v28 = vld [vmem:[#allocation2 + $0x278] sm:$0xff] }
  0xb2   : > { %1111 = vmatprep.mubr.f32.mxu1 %v277_v29  ;;  %v323_v29 = vld [vmem:[#allocation2 + $0x270] sm:$0xff] }
  0xb3   : > { %486 = vmatmul.mubr.f32.gmra.mrb[10].mxu0 %v260_v30  ;;  %v327_v30 = vld [vmem:[#allocation2 + $0x290] sm:$0xff] }
  0xb4   : > { %490 = vmatprep.mubr.f32.mxu0 %v264_v31  ;;  %v326_v31 = vld [vmem:[#allocation2 + $0x288] sm:$0xff] }
  0xb5   : > { %1112 = vmatmul.mubr.f32.gmra.mrb[10].mxu1 %v280_v32  ;;  %v330_v32 = vld [vmem:[#allocation2 + $0x2a8] sm:$0xff] }
  0xb6   : > { %1114 = vmatprep.mubr.f32.mxu1 %v283_v33  ;;  %v329_v33 = vld [vmem:[#allocation2 + $0x2a0] sm:$0xff] }
  0xb7   : > { %491 = vmatmul.mubr.f32.gmra.mrb[12].mxu0 %v263_v34  ;;  %v333_v34 = vld [vmem:[#allocation2 + $0x2c0] sm:$0xff] }
  0xb8   : > { %495 = vmatprep.mubr.f32.mxu0 %v267_v35  ;;  %v332_v35 = vld [vmem:[#allocation2 + $0x2b8] sm:$0xff] }
  0xb9   : > { %1115 = vmatmul.mubr.f32.gmra.mrb[12].mxu1 %v286_v36  ;;  %v336_v36 = vld [vmem:[#allocation2 + $0x2d8] sm:$0xff] }
  0xba   : > { %1117 = vmatprep.mubr.f32.mxu1 %v289_v37  ;;  %v335_v37 = vld [vmem:[#allocation2 + $0x2d0] sm:$0xff] }
  0xbb   : > { %496 = vmatmul.mubr.f32.gmra.mrb[14].mxu0 %v266_v38  ;;  %v339_v38 = vld [vmem:[#allocation2 + $0x2f0] sm:$0xff] }
  0xbc   : > { %500 = vmatprep.mubr.f32.mxu0 %v270_v39  ;;  %v338_v39 = vld [vmem:[#allocation2 + $0x2e8] sm:$0xff] }
  0xbd   : > { %1118 = vmatmul.mubr.f32.gmra.mrb[14].mxu1 %v292_v40  ;;  %v1682_v40 = vld [vmem:[%s243_s10] ss:$0 sm:$0xff] }
  0xbe   : > { %1120 = vmatprep.mubr.f32.mxu1 %v295_v41 }
  0xbf   : > { %501 = vmatmul.mubr.f32.gmra.mrb[16].mxu0 %v269_v42 }
  0xc0   : > { %505 = vmatprep.mubr.f32.mxu0 %v273_v43 }
  0xc1   : > { %1121 = vmatmul.mubr.f32.gmra.mrb[16].mxu1 %v298_v44 }
  0xc2   : > { %1123 = vmatprep.mubr.f32.mxu1 %v301_v45 }
  0xc3   : > { %506 = vmatmul.mubr.f32.gmra.mrb[18].mxu0 %v272_v46 }
  0xc4   : > { %510 = vmatprep.mubr.f32.mxu0 %v276_v47 }
  0xc5   : > { %1124 = vmatmul.mubr.f32.gmra.mrb[18].mxu1 %v304_v48 }
  0xc6   : > { %1126 = vmatprep.mubr.f32.mxu1 %v307_v49 }
  0xc7   : > { %511 = vmatmul.mubr.f32.gmra.mrb[20].mxu0 %v275_v50 }
  0xc8   : > { %515 = vmatprep.mubr.f32.mxu0 %v279_v51 }
  0xc9   : > { %1127 = vmatmul.mubr.f32.gmra.mrb[20].mxu1 %v310_v52 }
  0xca   : > { %1129 = vmatprep.mubr.f32.mxu1 %v313_v53 }
  0xcb   : > { %516 = vmatmul.mubr.f32.gmra.mrb[22].mxu0 %v278_v54 }
  0xcc   : > { %520 = vmatprep.mubr.f32.mxu0 %v282_v55 }
  0xcd   : > { %1130 = vmatmul.mubr.f32.gmra.mrb[22].mxu1 %v316_v56 }
  0xce   : > { %1132 = vmatprep.mubr.f32.mxu1 %v319_v57 }
  0xcf   : > { %521 = vmatmul.mubr.f32.gmra.mrb[24].mxu0 %v281_v58 }
  0xd0   : > { %525 = vmatprep.mubr.f32.mxu0 %v285_v59 }
  0xd1   : > { %1133 = vmatmul.mubr.f32.gmra.mrb[24].mxu1 %v322_v60 }
  0xd2   : > { %1135 = vmatprep.mubr.f32.mxu1 %v325_v61 }
  0xd3   : > { %526 = vmatmul.mubr.f32.gmra.mrb[26].mxu0 %v284_v62 }
  0xd4   : > { %530 = vmatprep.mubr.f32.mxu0 %v288_v63 }
  0xd5   : > { %1136 = vmatmul.mubr.f32.gmra.mrb[26].mxu1 %v328_v0 }
  0xd6   : > { %1138 = vmatprep.mubr.f32.mxu1 %v331_v1 }
  0xd7   : > { %531 = vmatmul.mubr.f32.gmra.mrb[28].mxu0 %v287_v2 }
  0xd8   : > { %535 = vmatprep.mubr.f32.mxu0 %v291_v3 }
  0xd9   : > { %1139 = vmatmul.mubr.f32.gmra.mrb[28].mxu1 %v334_v4 }
  0xda   : > { %1141 = vmatprep.mubr.f32.mxu1 %v337_v5 }
  0xdb   : > { %536 = vmatmul.mubr.f32.gmra.mrb[30].mxu0 %v290_v6 }
  0xdc   : > { %540 = vmatprep.mubr.f32.mxu0 %v294_v7 }
  0xdd   : > { %1142 = vmatmul.mubr.f32.gmra.mrb[30].mxu1 %v340_v8 }
  0xdf   : > { %541 = vmatmul.mubr.f32.gmra.mrb[32].mxu0 %v293_v9 }
  0xe0   : > { %545 = vmatprep.mubr.f32.mxu0 %v297_v10 }
  0xe3   : > { %546 = vmatmul.mubr.f32.gmra.mrb[34].mxu0 %v296_v11 }
  0xe4   : > { %550 = vmatprep.mubr.f32.mxu0 %v300_v12 }
  0xe7   : > { %551 = vmatmul.mubr.f32.gmra.mrb[36].mxu0 %v299_v13 }
  0xe8   : > { %555 = vmatprep.mubr.f32.mxu0 %v303_v14 }
  0xeb   : > { %556 = vmatmul.mubr.f32.gmra.mrb[38].mxu0 %v302_v15 }
  0xec   : > { %560 = vmatprep.mubr.f32.mxu0 %v306_v16 }
  0xef   : > { %561 = vmatmul.mubr.f32.gmra.mrb[40].mxu0 %v305_v17 }
  0xf0   : > { %565 = vmatprep.mubr.f32.mxu0 %v309_v18 }
  0xf3   : > { %566 = vmatmul.mubr.f32.gmra.mrb[42].mxu0 %v308_v19 }
  0xf4   : > { %570 = vmatprep.mubr.f32.mxu0 %v312_v20 }
  0xf7   : > { %571 = vmatmul.mubr.f32.gmra.mrb[44].mxu0 %v311_v21 }
  0xf8   : > { %575 = vmatprep.mubr.f32.mxu0 %v315_v22 }
  0xfb   : > { %576 = vmatmul.mubr.f32.gmra.mrb[46].mxu0 %v314_v23 }
  0xfc   : > { %580 = vmatprep.mubr.f32.mxu0 %v318_v24 }
  0xff   : > { %581 = vmatmul.mubr.f32.gmra.mrb[48].mxu0 %v317_v25 }
 0x100   : > { %585 = vmatprep.mubr.f32.mxu0 %v321_v26 }
 0x103   : > { %586 = vmatmul.mubr.f32.gmra.mrb[50].mxu0 %v320_v27 }
 0x104   : > { %590 = vmatprep.mubr.f32.mxu0 %v324_v28 }
 0x107   : > { %591 = vmatmul.mubr.f32.gmra.mrb[52].mxu0 %v323_v29 }
 0x108   : > { %595 = vmatprep.mubr.f32.mxu0 %v327_v30 }
 0x10b   : > { %596 = vmatmul.mubr.f32.gmra.mrb[54].mxu0 %v326_v31 }
 0x10c   : > { %600 = vmatprep.mubr.f32.mxu0 %v330_v32 }
 0x10f   : > { %601 = vmatmul.mubr.f32.gmra.mrb[56].mxu0 %v329_v33 }
 0x110   : > { %605 = vmatprep.mubr.f32.mxu0 %v333_v34 }
 0x113   : > { %606 = vmatmul.mubr.f32.gmra.mrb[58].mxu0 %v332_v35 }
 0x114   : > { %610 = vmatprep.mubr.f32.mxu0 %v336_v36 }
 0x117   : > { %611 = vmatmul.mubr.f32.gmra.mrb[60].mxu0 %v335_v37 }
 0x118   : > { %615 = vmatprep.mubr.f32.mxu0 %v339_v38 }
 0x11b   : > { %616 = vmatmul.mubr.f32.gmra.mrb[62].mxu0 %v338_v39 }
 0x172   : > { %v462_v41 = vpop.f32.mrb[0].mxu0 }
 0x173   : > { %v463_v42 = vadd.f32 %v1682_v40, %v462_v41  ;;  %v464_v43 = vpop.f32.mrb[1].mxu0 }
 0x174   : > { %v1098_v44 = vpop.f32.mrb[0].mxu1 }
 0x175   : > { %v687_v45 = vpop.f32.mrb[1].mxu1 }
 0x176   : > { %v688_v46 = vadd.f32 %v687_v45, %v463_v42  ;;  %v467_v47 = vpop.f32.mrb[2].mxu0 }
 0x177   : > { %v468_v48 = vadd.f32 %v1682_v40, %v467_v47  ;;  %v469_v49 = vpop.f32.mrb[3].mxu0 }
 0x178   : > { %846 = vst [vmem:[%s1686_s7] sm:$0xff] %v688_v46  ;;  %v1101_v50 = vpop.f32.mrb[2].mxu1 }
 0x179   : > { %v697_v51 = vpop.f32.mrb[3].mxu1  ;;  %v693_v52 = vadd.f32 %v1098_v44, %v468_v48 }
 0x17a   : > { %v472_v53 = vpop.f32.mrb[4].mxu0 }
 0x17b   : > { %847 = vst [vmem:[%s1686_s7 + $0x8] sm:$0xff] %v693_v52  ;;  %v473_v54 = vadd.f32 %v1682_v40, %v472_v53  ;;  %v474_v55 = vpop.f32.mrb[5].mxu0 }
 0x17c   : > { %v1104_v56 = vpop.f32.mrb[4].mxu1 }
 0x17d   : > { %v707_v57 = vpop.f32.mrb[5].mxu1  ;;  %v698_v58 = vadd.f32 %v697_v51, %v473_v54 }
 0x17e   : > { %v477_v59 = vpop.f32.mrb[6].mxu0 }
 0x17f   : > { %848 = vst [vmem:[%s1686_s7 + $0x10] sm:$0xff] %v698_v58  ;;  %v478_v60 = vadd.f32 %v1682_v40, %v477_v59  ;;  %v479_v61 = vpop.f32.mrb[7].mxu0 }
 0x180   : > { %v1107_v62 = vpop.f32.mrb[6].mxu1 }
 0x181   : > { %v717_v63 = vpop.f32.mrb[7].mxu1  ;;  %v703_v0 = vadd.f32 %v1101_v50, %v478_v60 }
 0x182   : > { %v482_v1 = vpop.f32.mrb[8].mxu0 }
 0x183   : > { %849 = vst [vmem:[%s1686_s7 + $0x18] sm:$0xff] %v703_v0  ;;  %v483_v2 = vadd.f32 %v1682_v40, %v482_v1  ;;  %v484_v3 = vpop.f32.mrb[9].mxu0 }
 0x184   : > { %v1110_v4 = vpop.f32.mrb[8].mxu1 }
 0x185   : > { %v727_v5 = vpop.f32.mrb[9].mxu1  ;;  %v708_v6 = vadd.f32 %v707_v57, %v483_v2 }
 0x186   : > { %v487_v7 = vpop.f32.mrb[10].mxu0 }
 0x187   : > { %850 = vst [vmem:[%s1686_s7 + $0x20] sm:$0xff] %v708_v6  ;;  %v488_v8 = vadd.f32 %v1682_v40, %v487_v7  ;;  %v489_v9 = vpop.f32.mrb[11].mxu0 }
 0x188   : > { %v1113_v10 = vpop.f32.mrb[10].mxu1 }
 0x189   : > { %v737_v11 = vpop.f32.mrb[11].mxu1  ;;  %v713_v12 = vadd.f32 %v1104_v56, %v488_v8 }
 0x18a   : > { %v492_v13 = vpop.f32.mrb[12].mxu0 }
 0x18b   : > { %851 = vst [vmem:[%s1686_s7 + $0x28] sm:$0xff] %v713_v12  ;;  %v493_v14 = vadd.f32 %v1682_v40, %v492_v13  ;;  %v494_v15 = vpop.f32.mrb[13].mxu0 }
 0x18c   : > { %v1116_v16 = vpop.f32.mrb[12].mxu1 }
 0x18d   : > { %v747_v17 = vpop.f32.mrb[13].mxu1  ;;  %v718_v18 = vadd.f32 %v717_v63, %v493_v14 }
 0x18e   : > { %v497_v19 = vpop.f32.mrb[14].mxu0 }
 0x18f   : > { %852 = vst [vmem:[%s1686_s7 + $0x30] sm:$0xff] %v718_v18  ;;  %v498_v20 = vadd.f32 %v1682_v40, %v497_v19  ;;  %v499_v21 = vpop.f32.mrb[15].mxu0 }
 0x190   : > { %v1119_v22 = vpop.f32.mrb[14].mxu1 }
 0x191   : > { %v757_v23 = vpop.f32.mrb[15].mxu1  ;;  %v723_v24 = vadd.f32 %v1107_v62, %v498_v20 }
 0x192   : > { %v502_v25 = vpop.f32.mrb[16].mxu0 }
 0x193   : > { %853 = vst [vmem:[%s1686_s7 + $0x38] sm:$0xff] %v723_v24  ;;  %v503_v26 = vadd.f32 %v1682_v40, %v502_v25  ;;  %v504_v27 = vpop.f32.mrb[17].mxu0 }
 0x194   : > { %v1122_v28 = vpop.f32.mrb[16].mxu1 }
 0x195   : > { %v767_v29 = vpop.f32.mrb[17].mxu1  ;;  %v728_v30 = vadd.f32 %v727_v5, %v503_v26 }
 0x196   : > { %v507_v31 = vpop.f32.mrb[18].mxu0 }
 0x197   : > { %854 = vst [vmem:[%s1686_s7 + $0x40] sm:$0xff] %v728_v30  ;;  %v508_v32 = vadd.f32 %v1682_v40, %v507_v31  ;;  %v509_v33 = vpop.f32.mrb[19].mxu0 }
 0x198   : > { %v1706_v34 = vpop.f32.mrb[18].mxu1 }
 0x199   : > { %v777_v35 = vpop.f32.mrb[19].mxu1  ;;  %v733_v36 = vadd.f32 %v1110_v4, %v508_v32 }
 0x19a   : > { %v512_v37 = vpop.f32.mrb[20].mxu0 }
 0x19b   : > { %855 = vst [vmem:[%s1686_s7 + $0x48] sm:$0xff] %v733_v36  ;;  %v513_v38 = vadd.f32 %v1682_v40, %v512_v37  ;;  %v514_v39 = vpop.f32.mrb[21].mxu0 }
 0x19c   : > { %v1710_v41 = vpop.f32.mrb[20].mxu1 }
 0x19d   : > { %v787_v42 = vpop.f32.mrb[21].mxu1  ;;  %v738_v43 = vadd.f32 %v737_v11, %v513_v38 }
 0x19e   : > { %v517_v44 = vpop.f32.mrb[22].mxu0 }
 0x19f   : > { %856 = vst [vmem:[%s1686_s7 + $0x50] sm:$0xff] %v738_v43  ;;  %v518_v45 = vadd.f32 %v1682_v40, %v517_v44  ;;  %v519_v46 = vpop.f32.mrb[23].mxu0 }
 0x1a0   : > { %v1714_v47 = vpop.f32.mrb[22].mxu1 }
 0x1a1   : > { %v1716_v48 = vpop.f32.mrb[23].mxu1  ;;  %v743_v49 = vadd.f32 %v1113_v10, %v518_v45 }
 0x1a2   : > { %v522_v50 = vpop.f32.mrb[24].mxu0 }
 0x1a3   : > { %857 = vst [vmem:[%s1686_s7 + $0x58] sm:$0xff] %v743_v49  ;;  %v523_v51 = vadd.f32 %v1682_v40, %v522_v50  ;;  %v524_v52 = vpop.f32.mrb[25].mxu0 }
 0x1a4   : > { %v1720_v53 = vpop.f32.mrb[24].mxu1 }
 0x1a5   : > { %v1722_v54 = vpop.f32.mrb[25].mxu1  ;;  %v748_v55 = vadd.f32 %v747_v17, %v523_v51 }
 0x1a6   : > { %v527_v56 = vpop.f32.mrb[26].mxu0 }
 0x1a7   : > { %858 = vst [vmem:[%s1686_s7 + $0x60] sm:$0xff] %v748_v55  ;;  %v528_v57 = vadd.f32 %v1682_v40, %v527_v56  ;;  %v529_v58 = vpop.f32.mrb[27].mxu0 }
 0x1a8   : > { %v1726_v59 = vpop.f32.mrb[26].mxu1 }
 0x1a9   : > { %v1728_v60 = vpop.f32.mrb[27].mxu1  ;;  %v753_v61 = vadd.f32 %v1116_v16, %v528_v57 }
 0x1aa   : > { %v532_v62 = vpop.f32.mrb[28].mxu0 }
 0x1ab   : > { %859 = vst [vmem:[%s1686_s7 + $0x68] sm:$0xff] %v753_v61  ;;  %v533_v63 = vadd.f32 %v1682_v40, %v532_v62  ;;  %v534_v0 = vpop.f32.mrb[29].mxu0 }
 0x1ac   : > { %v1732_v1 = vpop.f32.mrb[28].mxu1 }
 0x1ad   : > { %v1734_v2 = vpop.f32.mrb[29].mxu1  ;;  %v758_v3 = vadd.f32 %v757_v23, %v533_v63 }
 0x1ae   : > { %v537_v4 = vpop.f32.mrb[30].mxu0 }
 0x1af   : > { %860 = vst [vmem:[%s1686_s7 + $0x70] sm:$0xff] %v758_v3  ;;  %v538_v5 = vadd.f32 %v1682_v40, %v537_v4  ;;  %v539_v6 = vpop.f32.mrb[31].mxu0 }
 0x1b0   : > { %v1738_v7 = vpop.f32.mrb[30].mxu1 }
 0x1b1   : > { %v1740_v8 = vpop.f32.mrb[31].mxu1  ;;  %v763_v9 = vadd.f32 %v1119_v22, %v538_v5 }
 0x1b2   : > { %v542_v10 = vpop.f32.mrb[32].mxu0 }
 0x1b3   : > { %861 = vst [vmem:[%s1686_s7 + $0x78] sm:$0xff] %v763_v9  ;;  %v543_v11 = vadd.f32 %v1682_v40, %v542_v10  ;;  %v544_v12 = vpop.f32.mrb[33].mxu0 }
 0x1b5   : > { %v768_v13 = vadd.f32 %v767_v29, %v543_v11 }
 0x1b6   : > { %v547_v14 = vpop.f32.mrb[34].mxu0 }
 0x1b7   : > { %862 = vst [vmem:[%s1686_s7 + $0x80] sm:$0xff] %v768_v13  ;;  %v548_v15 = vadd.f32 %v1682_v40, %v547_v14  ;;  %v549_v16 = vpop.f32.mrb[35].mxu0 }
 0x1b9   : > { %v773_v17 = vadd.f32 %v1122_v28, %v548_v15 }
 0x1ba   : > { %v552_v18 = vpop.f32.mrb[36].mxu0 }
 0x1bb   : > { %863 = vst [vmem:[%s1686_s7 + $0x88] sm:$0xff] %v773_v17  ;;  %v553_v19 = vadd.f32 %v1682_v40, %v552_v18  ;;  %v554_v20 = vpop.f32.mrb[37].mxu0 }
 0x1bd   : > { %v778_v21 = vadd.f32 %v777_v35, %v553_v19 }
 0x1be   : > { %v557_v22 = vpop.f32.mrb[38].mxu0 }
 0x1bf   : > { %864 = vst [vmem:[%s1686_s7 + $0x90] sm:$0xff] %v778_v21  ;;  %v558_v23 = vadd.f32 %v1682_v40, %v557_v22  ;;  %v559_v24 = vpop.f32.mrb[39].mxu0 }
 0x1c1   : > { %v783_v25 = vadd.f32 %v1706_v34, %v558_v23 }
 0x1c2   : > { %v562_v26 = vpop.f32.mrb[40].mxu0 }
 0x1c3   : > { %865 = vst [vmem:[%s1686_s7 + $0x98] sm:$0xff] %v783_v25  ;;  %v563_v27 = vadd.f32 %v1682_v40, %v562_v26  ;;  %v564_v28 = vpop.f32.mrb[41].mxu0 }
 0x1c5   : > { %v788_v29 = vadd.f32 %v787_v42, %v563_v27 }
 0x1c6   : > { %v567_v30 = vpop.f32.mrb[42].mxu0 }
 0x1c7   : > { %866 = vst [vmem:[%s1686_s7 + $0xa0] sm:$0xff] %v788_v29  ;;  %v568_v31 = vadd.f32 %v1682_v40, %v567_v30  ;;  %v569_v32 = vpop.f32.mrb[43].mxu0 }
 0x1c9   : > { %v793_v33 = vadd.f32 %v1710_v41, %v568_v31 }
 0x1ca   : > { %v572_v35 = vpop.f32.mrb[44].mxu0 }
 0x1cb   : > { %867 = vst [vmem:[%s1686_s7 + $0xa8] sm:$0xff] %v793_v33  ;;  %v573_v34 = vadd.f32 %v1682_v40, %v572_v35  ;;  %v574_v36 = vpop.f32.mrb[45].mxu0 }
 0x1cd   : > { %v798_v37 = vadd.f32 %v1716_v48, %v573_v34 }
 0x1ce   : > { %v577_v38 = vpop.f32.mrb[46].mxu0 }
 0x1cf   : > { %868 = vst [vmem:[%s1686_s7 + $0xb0] sm:$0xff] %v798_v37  ;;  %v578_v39 = vadd.f32 %v1682_v40, %v577_v38  ;;  %v579_v42 = vpop.f32.mrb[47].mxu0 }
 0x1d1   : > { %v803_v43 = vadd.f32 %v1714_v47, %v578_v39 }
 0x1d2   : > { %v582_v44 = vpop.f32.mrb[48].mxu0 }
 0x1d3   : > { %869 = vst [vmem:[%s1686_s7 + $0xb8] sm:$0xff] %v803_v43  ;;  %v583_v41 = vadd.f32 %v1682_v40, %v582_v44  ;;  %v584_v45 = vpop.f32.mrb[49].mxu0 }
 0x1d5   : > { %v808_v46 = vadd.f32 %v1722_v54, %v583_v41 }
 0x1d6   : > { %v587_v49 = vpop.f32.mrb[50].mxu0 }
 0x1d7   : > { %870 = vst [vmem:[%s1686_s7 + $0xc0] sm:$0xff] %v808_v46  ;;  %v588_v48 = vadd.f32 %v1682_v40, %v587_v49  ;;  %v589_v50 = vpop.f32.mrb[51].mxu0 }
 0x1d9   : > { %v813_v51 = vadd.f32 %v1720_v53, %v588_v48 }
 0x1da   : > { %v592_v52 = vpop.f32.mrb[52].mxu0 }
 0x1db   : > { %871 = vst [vmem:[%s1686_s7 + $0xc8] sm:$0xff] %v813_v51  ;;  %v593_v47 = vadd.f32 %v1682_v40, %v592_v52  ;;  %v594_v55 = vpop.f32.mrb[53].mxu0 }
 0x1dd   : > { %v818_v56 = vadd.f32 %v1728_v60, %v593_v47 }
 0x1de   : > { %v597_v57 = vpop.f32.mrb[54].mxu0 }
 0x1df   : > { %872 = vst [vmem:[%s1686_s7 + $0xd0] sm:$0xff] %v818_v56  ;;  %v598_v54 = vadd.f32 %v1682_v40, %v597_v57  ;;  %v599_v58 = vpop.f32.mrb[55].mxu0 }
 0x1e1   : > { %v823_v61 = vadd.f32 %v1726_v59, %v598_v54 }
 0x1e2   : > { %v602_v62 = vpop.f32.mrb[56].mxu0 }
 0x1e3   : > { %873 = vst [vmem:[%s1686_s7 + $0xd8] sm:$0xff] %v823_v61  ;;  %v603_v53 = vadd.f32 %v1682_v40, %v602_v62  ;;  %v604_v63 = vpop.f32.mrb[57].mxu0 }
 0x1e5   : > { %v828_v0 = vadd.f32 %v1734_v2, %v603_v53 }
 0x1e6   : > { %v607_v3 = vpop.f32.mrb[58].mxu0 }
 0x1e7   : > { %874 = vst [vmem:[%s1686_s7 + $0xe0] sm:$0xff] %v828_v0  ;;  %v608_v60 = vadd.f32 %v1682_v40, %v607_v3  ;;  %v609_v4 = vpop.f32.mrb[59].mxu0 }
 0x1e9   : > { %v833_v5 = vadd.f32 %v1732_v1, %v608_v60 }
 0x1ea   : > { %v612_v6 = vpop.f32.mrb[60].mxu0 }
 0x1eb   : > { %875 = vst [vmem:[%s1686_s7 + $0xe8] sm:$0xff] %v833_v5  ;;  %v613_v59 = vadd.f32 %v1682_v40, %v612_v6  ;;  %v614_v9 = vpop.f32.mrb[61].mxu0 }
 0x1ed   : > { %v838_v10 = vadd.f32 %v1740_v8, %v613_v59 }
 0x1ee   : > { %v617_v2 = vpop.f32.mrb[62].mxu0 }
 0x1ef   : > { %876 = vst [vmem:[%s1686_s7 + $0xf0] sm:$0xff] %v838_v10  ;;  %v618_v11 = vadd.f32 %v1682_v40, %v617_v2  ;;  %v619_v12 = vpop.f32.mrb[63].mxu0 }
 0x1f1   : > { %v843_v1 = vadd.f32 %v1738_v7, %v618_v11 }
 0x1f3   : > { %877 = vst [vmem:[%s1686_s7 + $0xf8] sm:$0xff] %v843_v1 }
 0x1f4   : > { %1360 = shalt.err (!%p1357_p9)
}
 0x1f5   : > { %s1361_s6 = scalar_lea.hbm %s1790_s21, 4096  ;;  %s1365_s24 = scalar_lea.hbm %s1846_s3, 8192 }
 0x1f6   : > { %p1362_p1 = scmp.ne.s32.totalorder %s1790_s21, %s1361_s6  ;;  %p1366_p7 = scmp.lt.u32.totalorder %s1790_s21, %s1846_s3 }
 0x1f7   : > { %p1367_p11 = scmp.lt.u32.totalorder %s1365_s24, %s1361_s6  ;;  %p1369_p6 = scmp.lt.u32.totalorder %s1361_s6, %s1790_s21 }
 0x1f8   : > { %p1363_p2 = pnand %p1362_p1, %p1558_p10 }
 0x1f9   : > { %p1368_p4 = por %p1367_p11, %p1366_p7 }
 0x1fa   : > { %p1364_p3 = pneg %p1363_p2 }
 0x1fb   : > { %p1370_p8 = por %p1369_p6, %p1368_p4 }
 0x1fd   : > { %p1371_p12 = pnand %p1370_p8, %p1364_p3 }
 0x1ff   : > { %1374 = shalt.err (!%p1371_p12)
}
 0x200   : > { %s1440_s7 = smov 128   ;;  %s1441_s18 = smov 256  }
 0x201   : > { %s1442_s9 = smov 8  }
 0x202   : > { %1217 = dma.vmem_to_hbm [thread:$0]  (%p1558_p10), %s1792_s19, 4096, %s1790_s21, %s879_s15, %s1440_s7, %s1441_s18, %s1442_s9  }
 0x203 PF: > { %s909_s30 = sand.u32 1, %s1413_s12   ;;  %p1863_p13 = scmp.ne.s32.totalorder %s1854_s23, 0 }
 0x204   : > { %p1864_p0 = scmp.ge.s32.totalorder %s1433_s17, 2  ;;  %s910_s27 = scalar_lea.sflag [#allocation4], %s909_s30 }
 0x206   : > { %p1228_p5 = pnand %p1864_p0, %p1863_p13 }
 0x208   : > { %1408 = dma.done.wait (!%p1228_p5), %s910_s27, 4096  }
 0x209   : > { %1410 = vsyncadd (!%p1228_p5), %s910_s27, 4294963200  ;;  %s20_s17 = sadd.s32 1, %s1433_s17   ;;  %s1865_s12 = smov %s1417_s13 }
 0x20a   : > { %p17_p9 = scmp.ge.s32.totalorder %s20_s17, 4   ;;  %s1866_s13 = smov %s1421_s14 }
 0x20b   : > { %s1867_s14 = smov %s1567_s5  ;;  %s1868_s15 = smov %s1429_s16 }
 0x20c   : > { %s1869_s16 = smov %s1871_s28  ;;  %19 = sbr.rel (!%p17_p9) target bundleno = 7 (0x7), region = 86 }
 0x213   :  { %915 = vsyncpa [#allocation3], 1 }
 0x214   :  { %917 = vsyncpa [#allocation3 + $0x1], 1 }
 0x215   :  { %918 = vsyncpa [#allocation6], 1 }
 0x216   :  { %920 = vsyncpa [#allocation6 + $0x1], 1 }
 0x217   :  { %921 = vsyncpa [#allocation4], 1 }
 0x218   :  { %923 = vsyncpa [#allocation4 + $0x1], 1 }

</bundles_post_ra>
